<compile_context>
chip_gen: v6e
topology: v6e:2x2x1
jax: 0.10.0
libtpu: 0.0.40
codegen_flags: <defaults>
</compile_context>

<pallas_src>
import jax
import jax.numpy as jnp
from jax.experimental import pallas as pl
from jax.experimental.pallas import tpu as pltpu


_CHUNK = 8       # rows per gather chunk in the HBM path
_LOOKAHEAD = 8   # chunks kept in flight ahead of the wait front (<=128 row DMAs)


def _apply_head(u_rows, i_rows, wu_ref, wi_ref, b_ref, out_ref):
    """out = sigmoid(w_u @ u^T + w_i @ i^T + b), stored lane-dense as (1,1,TB)."""
    dn = (((1,), (1,)), ((), ()))  # contract the embedding axis of both operands
    acc = jax.lax.dot_general(wu_ref[...], u_rows, dn,
                              preferred_element_type=jnp.float32)
    acc = acc + jax.lax.dot_general(wi_ref[...], i_rows, dn,
                                    preferred_element_type=jnp.float32)
    logits = acc[0:1, :] + b_ref[0]          # (1, TB); rows 1..7 are zero padding
    out_ref[...] = jax.nn.sigmoid(logits).reshape(out_ref.shape)


def _vmem_tables_kernel(uid_ref, iid_ref,        # scalar-prefetch ids (SMEM)
                        utbl_ref, itbl_ref,      # full tables, VMEM resident
                        wu_ref, wi_ref,          # (8, E) weight halves (row 0 real)
                        b_ref,                   # (1,) SMEM bias
                        out_ref,                 # (1, 1, TB) output block
                        u_buf, i_buf):           # (TB, E) VMEM gather buffers
    tb = u_buf.shape[0]
    base = pl.program_id(0) * tb

    def gather(r, carry):
        u_buf[pl.ds(r, 1), :] = utbl_ref[pl.ds(uid_ref[base + r], 1), :]
        i_buf[pl.ds(r, 1), :] = itbl_ref[pl.ds(iid_ref[base + r], 1), :]
        return carry

    jax.lax.fori_loop(0, tb, gather, 0, unroll=8)
    _apply_head(u_buf[...], i_buf[...], wu_ref, wi_ref, b_ref, out_ref)


def _hbm_tables_kernel(uid_ref, iid_ref,
                       utbl_hbm, itbl_hbm,       # tables left in HBM (pl.ANY)
                       wu_ref, wi_ref, b_ref,
                       out_ref,
                       u_buf, i_buf,             # (TB, E) VMEM gather buffers
                       sems):                    # 2 shared DMA semaphores
    tb = u_buf.shape[0]
    n_chunks = tb // _CHUNK
    base = pl.program_id(0) * tb

    def issue_chunk(c):
        for r in range(_CHUNK):
            dst = c * _CHUNK + r
            pltpu.make_async_copy(utbl_hbm.at[pl.ds(uid_ref[base + dst], 1)],
                                  u_buf.at[pl.ds(dst, 1)], sems.at[0]).start()
            pltpu.make_async_copy(itbl_hbm.at[pl.ds(iid_ref[base + dst], 1)],
                                  i_buf.at[pl.ds(dst, 1)], sems.at[1]).start()

    def wait_chunk(c):
        for r in range(_CHUNK):
            dst = c * _CHUNK + r
            pltpu.make_async_copy(utbl_hbm.at[pl.ds(0, 1)],
                                  u_buf.at[pl.ds(dst, 1)], sems.at[0]).wait()
            pltpu.make_async_copy(itbl_hbm.at[pl.ds(0, 1)],
                                  i_buf.at[pl.ds(dst, 1)], sems.at[1]).wait()

    # Prime the look-ahead window (static prologue).
    for c in range(min(_LOOKAHEAD, n_chunks)):
        issue_chunk(c)

    # Keep _LOOKAHEAD chunks of row DMAs in flight while draining older chunks.
    @pl.loop(0, n_chunks)
    def _(c):
        @pl.when(c + _LOOKAHEAD < n_chunks)
        def _():
            issue_chunk(c + _LOOKAHEAD)
        wait_chunk(c)

    _apply_head(u_buf[...], i_buf[...], wu_ref, wi_ref, b_ref, out_ref)


def _padded_vmem_bytes(rows, cols, itemsize=4):
    # f32 VMEM arrays live in (8, 128) tiles -> both trailing dims pad up.
    return (-(-rows // 8) * 8) * (-(-cols // 128) * 128) * itemsize


def implicit_feedback_forward(user_ids, item_ids, user_table, item_table, w, b,
                              *, block_b=512, path="auto"):
    """user_ids/item_ids: (B,) int; tables: (U,E)/(I,E); w: (1,2E); b: 1 element.
    Returns (B, 1) float32.  path: "auto" | "vmem" | "hbm"."""
    B = int(user_ids.shape[0])
    U, E = user_table.shape
    I = item_table.shape[0]

    # Batch tiling: large tiles, but >=2 grid steps when possible so the
    # "parallel" axis can split across v7x's two TensorCores.
    tb = max(8, (min(block_b, max(B, 8)) // 8) * 8)
    if B > 8:
        half = ((-(-B // 2)) + 7) // 8 * 8
        tb = max(8, min(tb, half))
    n_tiles = int(pl.cdiv(B, tb))
    b_pad = n_tiles * tb

    uid = jnp.zeros((b_pad,), jnp.int32).at[:B].set(user_ids.astype(jnp.int32))
    iid = jnp.zeros((b_pad,), jnp.int32).at[:B].set(item_ids.astype(jnp.int32))

    w = jnp.asarray(w, jnp.float32)
    wu_p = jnp.pad(w[:, :E], ((0, 7), (0, 0)))      # (8, E), row 0 = w_u
    wi_p = jnp.pad(w[:, E:], ((0, 7), (0, 0)))      # (8, E), row 0 = w_i
    b1d = jnp.asarray(b, jnp.float32).reshape((1,))

    user_table = jnp.asarray(user_table, jnp.float32)
    item_table = jnp.asarray(item_table, jnp.float32)

    # Generation-aware VMEM budget (v5e/v6e: 128 MiB physical, v7x: 64 MiB).
    try:
        phys_vmem = int(pltpu.get_tpu_info().vmem_capacity_bytes)
    except Exception:
        phys_vmem = 64 * 1024 * 1024            # conservative (v7x-sized) fallback
    vmem_limit = max(32 * 1024 * 1024, int(phys_vmem * 0.85))

    table_bytes = _padded_vmem_bytes(U, E) + _padded_vmem_bytes(I, E)
    scratch_bytes = 2 * _padded_vmem_bytes(tb, E)
    # Worst case: the pipeline double-buffers the (index-constant) table blocks.
    est_vmem_path = 2 * table_bytes + scratch_bytes + (2 << 20)
    if path == "vmem":
        use_vmem_tables = True
    elif path == "hbm":
        use_vmem_tables = False
    else:
        use_vmem_tables = est_vmem_path <= int(0.85 * vmem_limit)

    const_map = lambda t, *_: (0, 0)
    out_spec = pl.BlockSpec((1, 1, tb), lambda t, *_: (t, 0, 0))
    wb_specs = [
        pl.BlockSpec((8, E), const_map),                       # w_u (padded)
        pl.BlockSpec((8, E), const_map),                       # w_i (padded)
        pl.BlockSpec(memory_space=pltpu.MemorySpace.SMEM),     # bias scalar
    ]

    if use_vmem_tables:
        kernel = _vmem_tables_kernel
        table_specs = [pl.BlockSpec((U, E), const_map),
                       pl.BlockSpec((I, E), const_map)]
        scratch = [pltpu.VMEM((tb, E), jnp.float32),
                   pltpu.VMEM((tb, E), jnp.float32)]
    else:
        kernel = _hbm_tables_kernel
        table_specs = [pl.BlockSpec(memory_space=pl.ANY),
                       pl.BlockSpec(memory_space=pl.ANY)]
        scratch = [pltpu.VMEM((tb, E), jnp.float32),
                   pltpu.VMEM((tb, E), jnp.float32),
                   pltpu.SemaphoreType.DMA((2,))]

    grid_spec = pltpu.PrefetchScalarGridSpec(
        num_scalar_prefetch=2,
        grid=(n_tiles,),
        in_specs=table_specs + wb_specs,
        out_specs=out_spec,
        scratch_shapes=scratch,
    )

    out = pl.pallas_call(
        kernel,
        out_shape=jax.ShapeDtypeStruct((n_tiles, 1, tb), jnp.float32),
        grid_spec=grid_spec,
        compiler_params=pltpu.CompilerParams(
            dimension_semantics=("parallel",),
            vmem_limit_bytes=int(vmem_limit)),
    )(uid, iid, user_table, item_table, wu_p, wi_p, b1d)

    return out.reshape(b_pad, 1)[:B]


def _reference(user_ids, item_ids, user_table, item_table, w, b):
    # Exact f32 mirror of the PyTorch forward (elementwise, no MXU rounding).
    E = user_table.shape[1]
    u_e = user_table[user_ids]
    i_e = item_table[item_ids]
    logits = (jnp.sum(u_e * w[:, :E], axis=1, keepdims=True)
              + jnp.sum(i_e * w[:, E:], axis=1, keepdims=True)
              + b.reshape(1, 1))
    return jax.nn.sigmoid(logits)


if __name__ == "__main__":
    NUM_USERS, NUM_ITEMS, EMB_DIM, BATCH = 64, 128, 32, 8

    key = jax.random.PRNGKey(0)
    k_u, k_i, k_w, k_b, k_uid, k_iid = jax.random.split(key, 6)

    user_table = jax.random.normal(k_u, (NUM_USERS, EMB_DIM), dtype=jnp.float32)
    item_table = jax.random.normal(k_i, (NUM_ITEMS, EMB_DIM), dtype=jnp.float32)
    w = jax.random.normal(k_w, (1, 2 * EMB_DIM), dtype=jnp.float32) * 0.1
    b = jax.random.normal(k_b, (1,), dtype=jnp.float32) * 0.1

    user_ids = jax.random.randint(k_uid, (BATCH,), 0, NUM_USERS, dtype=jnp.int32)
    item_ids = jax.random.randint(k_iid, (BATCH,), 0, NUM_ITEMS, dtype=jnp.int32)

    ref = _reference(user_ids, item_ids, user_table, item_table, w, b)

    # MXU f32 matmul passes can differ slightly from the elementwise reference.
    TOL = dict(atol=1e-3, rtol=1e-3)

    # 1) Auto path (small tables -> VMEM-resident fast path).
    out = jax.block_until_ready(
        implicit_feedback_forward(user_ids, item_ids, user_table, item_table, w, b))
    assert out.shape == (BATCH, 1)
    assert jnp.allclose(out, ref, **TOL), (out, ref)

    # 2) Forced large-vocab HBM gather path (chunked, double-look-ahead DMAs).
    out_hbm = jax.block_until_ready(
        implicit_feedback_forward(user_ids, item_ids, user_table, item_table, w, b,
                                  path="hbm"))
    assert jnp.allclose(out_hbm, ref, **TOL), (out_hbm, ref)

    # 3) Multi-tile + padded-tail config on both paths.
    B2 = 50
    uid2 = jax.random.randint(jax.random.PRNGKey(1), (B2,), 0, NUM_USERS, jnp.int32)
    iid2 = jax.random.randint(jax.random.PRNGKey(2), (B2,), 0, NUM_ITEMS, jnp.int32)
    ref2 = _reference(uid2, iid2, user_table, item_table, w, b)
    out2 = jax.block_until_ready(
        implicit_feedback_forward(uid2, iid2, user_table, item_table, w, b, block_b=32))
    assert out2.shape == (B2, 1)
    assert jnp.allclose(out2, ref2, **TOL), (out2, ref2)
    out2h = jax.block_until_ready(
        implicit_feedback_forward(uid2, iid2, user_table, item_table, w, b,
                                  block_b=32, path="hbm"))
    assert jnp.allclose(out2h, ref2, **TOL), (out2h, ref2)

    print("KERNEL_OK")
</pallas_src>

<mosaic_0001>
module attributes {stable_mosaic.version = 11 : i64} {
  func.func @_vmem_tables_kernel(%arg0: i32, %arg1: memref<8xi32, #tpu.memory_space<smem>>, %arg2: memref<8xi32, #tpu.memory_space<smem>>, %arg3: memref<64x32xf32, #tpu.memory_space<vmem>>, %arg4: memref<128x32xf32, #tpu.memory_space<vmem>>, %arg5: memref<8x32xf32, #tpu.memory_space<vmem>>, %arg6: memref<8x32xf32, #tpu.memory_space<vmem>>, %arg7: memref<1xf32, #tpu.memory_space<smem>>, %arg8: memref<1x1x8xf32, #tpu.memory_space<vmem>>, %arg9: memref<8x32xf32, #tpu.memory_space<vmem>>, %arg10: memref<8x32xf32, #tpu.memory_space<vmem>>) attributes {dimension_semantics = [#tpu.dimension_semantics<parallel>], iteration_bounds = array<i64: 1>, scalar_prefetch = 2 : i64, scratch_operands = 2 : i64, tpu.core_type = #tpu.core_type<tc>, window_params = [{pipeline_mode = #tpu.pipeline_mode<synchronous>, transform_indices = @transform_0, window_bounds = array<i64: 64, 32>}, {pipeline_mode = #tpu.pipeline_mode<synchronous>, transform_indices = @transform_1, window_bounds = array<i64: 128, 32>}, {pipeline_mode = #tpu.pipeline_mode<synchronous>, transform_indices = @transform_2, window_bounds = array<i64: 8, 32>}, {pipeline_mode = #tpu.pipeline_mode<synchronous>, transform_indices = @transform_3, window_bounds = array<i64: 8, 32>}, {transform_indices = @transform_4, window_bounds = array<i64: 1>}, {transform_indices = @transform_5, window_bounds = array<i64: 1, 1, 8>}]} {
    %c8_i32 = arith.constant 8 : i32
    %0 = arith.muli %arg0, %c8_i32 : i32
    %c0_i32 = arith.constant 0 : i32
    %1 = arith.addi %0, %c0_i32 : i32
    %2 = arith.index_cast %1 : i32 to index
    %3 = memref.load %arg1[%2] : memref<8xi32, #tpu.memory_space<smem>>
    %4 = arith.index_cast %3 : i32 to index
    %c0 = arith.constant 0 : index
    %5 = vector.load %arg3[%4, %c0] : memref<64x32xf32, #tpu.memory_space<vmem>>, vector<1x32xf32>
    %6 = arith.index_cast %c0_i32 : i32 to index
    %c0_0 = arith.constant 0 : index
    %7 = vector.load %arg9[%6, %c0_0] : memref<8x32xf32, #tpu.memory_space<vmem>>, vector<1x32xf32>
    tpu.vector_store %arg9[%6, %c0_0], %5 {strides = array<i32>} : memref<8x32xf32, #tpu.memory_space<vmem>>, vector<1x32xf32>,
    %8 = arith.addi %0, %c0_i32 : i32
    %9 = arith.index_cast %8 : i32 to index
    %10 = memref.load %arg2[%9] : memref<8xi32, #tpu.memory_space<smem>>
    %11 = arith.index_cast %10 : i32 to index
    %c0_1 = arith.constant 0 : index
    %12 = vector.load %arg4[%11, %c0_1] : memref<128x32xf32, #tpu.memory_space<vmem>>, vector<1x32xf32>
    %13 = arith.index_cast %c0_i32 : i32 to index
    %c0_2 = arith.constant 0 : index
    %14 = vector.load %arg10[%13, %c0_2] : memref<8x32xf32, #tpu.memory_space<vmem>>, vector<1x32xf32>
    tpu.vector_store %arg10[%13, %c0_2], %12 {strides = array<i32>} : memref<8x32xf32, #tpu.memory_space<vmem>>, vector<1x32xf32>,
    %c1_i32 = arith.constant 1 : i32
    %15 = arith.addi %0, %c1_i32 : i32
    %16 = arith.index_cast %15 : i32 to index
    %17 = memref.load %arg1[%16] : memref<8xi32, #tpu.memory_space<smem>>
    %18 = arith.index_cast %17 : i32 to index
    %c0_3 = arith.constant 0 : index
    %19 = vector.load %arg3[%18, %c0_3] : memref<64x32xf32, #tpu.memory_space<vmem>>, vector<1x32xf32>
    %20 = arith.index_cast %c1_i32 : i32 to index
    %c0_4 = arith.constant 0 : index
    %21 = vector.load %arg9[%20, %c0_4] : memref<8x32xf32, #tpu.memory_space<vmem>>, vector<1x32xf32>
    tpu.vector_store %arg9[%20, %c0_4], %19 {strides = array<i32>} : memref<8x32xf32, #tpu.memory_space<vmem>>, vector<1x32xf32>,
    %22 = arith.addi %0, %c1_i32 : i32
    %23 = arith.index_cast %22 : i32 to index
    %24 = memref.load %arg2[%23] : memref<8xi32, #tpu.memory_space<smem>>
    %25 = arith.index_cast %24 : i32 to index
    %c0_5 = arith.constant 0 : index
    %26 = vector.load %arg4[%25, %c0_5] : memref<128x32xf32, #tpu.memory_space<vmem>>, vector<1x32xf32>
    %27 = arith.index_cast %c1_i32 : i32 to index
    %c0_6 = arith.constant 0 : index
    %28 = vector.load %arg10[%27, %c0_6] : memref<8x32xf32, #tpu.memory_space<vmem>>, vector<1x32xf32>
    tpu.vector_store %arg10[%27, %c0_6], %26 {strides = array<i32>} : memref<8x32xf32, #tpu.memory_space<vmem>>, vector<1x32xf32>,
    %c2_i32 = arith.constant 2 : i32
    %29 = arith.addi %0, %c2_i32 : i32
    %30 = arith.index_cast %29 : i32 to index
    %31 = memref.load %arg1[%30] : memref<8xi32, #tpu.memory_space<smem>>
    %32 = arith.index_cast %31 : i32 to index
    %c0_7 = arith.constant 0 : index
    %33 = vector.load %arg3[%32, %c0_7] : memref<64x32xf32, #tpu.memory_space<vmem>>, vector<1x32xf32>
    %34 = arith.index_cast %c2_i32 : i32 to index
    %c0_8 = arith.constant 0 : index
    %35 = vector.load %arg9[%34, %c0_8] : memref<8x32xf32, #tpu.memory_space<vmem>>, vector<1x32xf32>
    tpu.vector_store %arg9[%34, %c0_8], %33 {strides = array<i32>} : memref<8x32xf32, #tpu.memory_space<vmem>>, vector<1x32xf32>,
    %36 = arith.addi %0, %c2_i32 : i32
    %37 = arith.index_cast %36 : i32 to index
    %38 = memref.load %arg2[%37] : memref<8xi32, #tpu.memory_space<smem>>
    %39 = arith.index_cast %38 : i32 to index
    %c0_9 = arith.constant 0 : index
    %40 = vector.load %arg4[%39, %c0_9] : memref<128x32xf32, #tpu.memory_space<vmem>>, vector<1x32xf32>
    %41 = arith.index_cast %c2_i32 : i32 to index
    %c0_10 = arith.constant 0 : index
    %42 = vector.load %arg10[%41, %c0_10] : memref<8x32xf32, #tpu.memory_space<vmem>>, vector<1x32xf32>
    tpu.vector_store %arg10[%41, %c0_10], %40 {strides = array<i32>} : memref<8x32xf32, #tpu.memory_space<vmem>>, vector<1x32xf32>,
    %c3_i32 = arith.constant 3 : i32
    %43 = arith.addi %0, %c3_i32 : i32
    %44 = arith.index_cast %43 : i32 to index
    %45 = memref.load %arg1[%44] : memref<8xi32, #tpu.memory_space<smem>>
    %46 = arith.index_cast %45 : i32 to index
    %c0_11 = arith.constant 0 : index
    %47 = vector.load %arg3[%46, %c0_11] : memref<64x32xf32, #tpu.memory_space<vmem>>, vector<1x32xf32>
    %48 = arith.index_cast %c3_i32 : i32 to index
    %c0_12 = arith.constant 0 : index
    %49 = vector.load %arg9[%48, %c0_12] : memref<8x32xf32, #tpu.memory_space<vmem>>, vector<1x32xf32>
    tpu.vector_store %arg9[%48, %c0_12], %47 {strides = array<i32>} : memref<8x32xf32, #tpu.memory_space<vmem>>, vector<1x32xf32>,
    %50 = arith.addi %0, %c3_i32 : i32
    %51 = arith.index_cast %50 : i32 to index
    %52 = memref.load %arg2[%51] : memref<8xi32, #tpu.memory_space<smem>>
    %53 = arith.index_cast %52 : i32 to index
    %c0_13 = arith.constant 0 : index
    %54 = vector.load %arg4[%53, %c0_13] : memref<128x32xf32, #tpu.memory_space<vmem>>, vector<1x32xf32>
    %55 = arith.index_cast %c3_i32 : i32 to index
    %c0_14 = arith.constant 0 : index
    %56 = vector.load %arg10[%55, %c0_14] : memref<8x32xf32, #tpu.memory_space<vmem>>, vector<1x32xf32>
    tpu.vector_store %arg10[%55, %c0_14], %54 {strides = array<i32>} : memref<8x32xf32, #tpu.memory_space<vmem>>, vector<1x32xf32>,
    %c4_i32 = arith.constant 4 : i32
    %57 = arith.addi %0, %c4_i32 : i32
    %58 = arith.index_cast %57 : i32 to index
    %59 = memref.load %arg1[%58] : memref<8xi32, #tpu.memory_space<smem>>
    %60 = arith.index_cast %59 : i32 to index
    %c0_15 = arith.constant 0 : index
    %61 = vector.load %arg3[%60, %c0_15] : memref<64x32xf32, #tpu.memory_space<vmem>>, vector<1x32xf32>
    %62 = arith.index_cast %c4_i32 : i32 to index
    %c0_16 = arith.constant 0 : index
    %63 = vector.load %arg9[%62, %c0_16] : memref<8x32xf32, #tpu.memory_space<vmem>>, vector<1x32xf32>
    tpu.vector_store %arg9[%62, %c0_16], %61 {strides = array<i32>} : memref<8x32xf32, #tpu.memory_space<vmem>>, vector<1x32xf32>,
    %64 = arith.addi %0, %c4_i32 : i32
    %65 = arith.index_cast %64 : i32 to index
    %66 = memref.load %arg2[%65] : memref<8xi32, #tpu.memory_space<smem>>
    %67 = arith.index_cast %66 : i32 to index
    %c0_17 = arith.constant 0 : index
    %68 = vector.load %arg4[%67, %c0_17] : memref<128x32xf32, #tpu.memory_space<vmem>>, vector<1x32xf32>
    %69 = arith.index_cast %c4_i32 : i32 to index
    %c0_18 = arith.constant 0 : index
    %70 = vector.load %arg10[%69, %c0_18] : memref<8x32xf32, #tpu.memory_space<vmem>>, vector<1x32xf32>
    tpu.vector_store %arg10[%69, %c0_18], %68 {strides = array<i32>} : memref<8x32xf32, #tpu.memory_space<vmem>>, vector<1x32xf32>,
    %c5_i32 = arith.constant 5 : i32
    %71 = arith.addi %0, %c5_i32 : i32
    %72 = arith.index_cast %71 : i32 to index
    %73 = memref.load %arg1[%72] : memref<8xi32, #tpu.memory_space<smem>>
    %74 = arith.index_cast %73 : i32 to index
    %c0_19 = arith.constant 0 : index
    %75 = vector.load %arg3[%74, %c0_19] : memref<64x32xf32, #tpu.memory_space<vmem>>, vector<1x32xf32>
    %76 = arith.index_cast %c5_i32 : i32 to index
    %c0_20 = arith.constant 0 : index
    %77 = vector.load %arg9[%76, %c0_20] : memref<8x32xf32, #tpu.memory_space<vmem>>, vector<1x32xf32>
    tpu.vector_store %arg9[%76, %c0_20], %75 {strides = array<i32>} : memref<8x32xf32, #tpu.memory_space<vmem>>, vector<1x32xf32>,
    %78 = arith.addi %0, %c5_i32 : i32
    %79 = arith.index_cast %78 : i32 to index
    %80 = memref.load %arg2[%79] : memref<8xi32, #tpu.memory_space<smem>>
    %81 = arith.index_cast %80 : i32 to index
    %c0_21 = arith.constant 0 : index
    %82 = vector.load %arg4[%81, %c0_21] : memref<128x32xf32, #tpu.memory_space<vmem>>, vector<1x32xf32>
    %83 = arith.index_cast %c5_i32 : i32 to index
    %c0_22 = arith.constant 0 : index
    %84 = vector.load %arg10[%83, %c0_22] : memref<8x32xf32, #tpu.memory_space<vmem>>, vector<1x32xf32>
    tpu.vector_store %arg10[%83, %c0_22], %82 {strides = array<i32>} : memref<8x32xf32, #tpu.memory_space<vmem>>, vector<1x32xf32>,
    %c6_i32 = arith.constant 6 : i32
    %85 = arith.addi %0, %c6_i32 : i32
    %86 = arith.index_cast %85 : i32 to index
    %87 = memref.load %arg1[%86] : memref<8xi32, #tpu.memory_space<smem>>
    %88 = arith.index_cast %87 : i32 to index
    %c0_23 = arith.constant 0 : index
    %89 = vector.load %arg3[%88, %c0_23] : memref<64x32xf32, #tpu.memory_space<vmem>>, vector<1x32xf32>
    %90 = arith.index_cast %c6_i32 : i32 to index
    %c0_24 = arith.constant 0 : index
    %91 = vector.load %arg9[%90, %c0_24] : memref<8x32xf32, #tpu.memory_space<vmem>>, vector<1x32xf32>
    tpu.vector_store %arg9[%90, %c0_24], %89 {strides = array<i32>} : memref<8x32xf32, #tpu.memory_space<vmem>>, vector<1x32xf32>,
    %92 = arith.addi %0, %c6_i32 : i32
    %93 = arith.index_cast %92 : i32 to index
    %94 = memref.load %arg2[%93] : memref<8xi32, #tpu.memory_space<smem>>
    %95 = arith.index_cast %94 : i32 to index
    %c0_25 = arith.constant 0 : index
    %96 = vector.load %arg4[%95, %c0_25] : memref<128x32xf32, #tpu.memory_space<vmem>>, vector<1x32xf32>
    %97 = arith.index_cast %c6_i32 : i32 to index
    %c0_26 = arith.constant 0 : index
    %98 = vector.load %arg10[%97, %c0_26] : memref<8x32xf32, #tpu.memory_space<vmem>>, vector<1x32xf32>
    tpu.vector_store %arg10[%97, %c0_26], %96 {strides = array<i32>} : memref<8x32xf32, #tpu.memory_space<vmem>>, vector<1x32xf32>,
    %c7_i32 = arith.constant 7 : i32
    %99 = arith.addi %0, %c7_i32 : i32
    %100 = arith.index_cast %99 : i32 to index
    %101 = memref.load %arg1[%100] : memref<8xi32, #tpu.memory_space<smem>>
    %102 = arith.index_cast %101 : i32 to index
    %c0_27 = arith.constant 0 : index
    %103 = vector.load %arg3[%102, %c0_27] : memref<64x32xf32, #tpu.memory_space<vmem>>, vector<1x32xf32>
    %104 = arith.index_cast %c7_i32 : i32 to index
    %c0_28 = arith.constant 0 : index
    %105 = vector.load %arg9[%104, %c0_28] : memref<8x32xf32, #tpu.memory_space<vmem>>, vector<1x32xf32>
    tpu.vector_store %arg9[%104, %c0_28], %103 {strides = array<i32>} : memref<8x32xf32, #tpu.memory_space<vmem>>, vector<1x32xf32>,
    %106 = arith.addi %0, %c7_i32 : i32
    %107 = arith.index_cast %106 : i32 to index
    %108 = memref.load %arg2[%107] : memref<8xi32, #tpu.memory_space<smem>>
    %109 = arith.index_cast %108 : i32 to index
    %c0_29 = arith.constant 0 : index
    %110 = vector.load %arg4[%109, %c0_29] : memref<128x32xf32, #tpu.memory_space<vmem>>, vector<1x32xf32>
    %111 = arith.index_cast %c7_i32 : i32 to index
    %c0_30 = arith.constant 0 : index
    %112 = vector.load %arg10[%111, %c0_30] : memref<8x32xf32, #tpu.memory_space<vmem>>, vector<1x32xf32>
    tpu.vector_store %arg10[%111, %c0_30], %110 {strides = array<i32>} : memref<8x32xf32, #tpu.memory_space<vmem>>, vector<1x32xf32>,
    %c8_i32_31 = arith.constant 8 : i32
    %c0_32 = arith.constant 0 : index
    %c0_33 = arith.constant 0 : index
    %113 = vector.load %arg9[%c0_32, %c0_33] : memref<8x32xf32, #tpu.memory_space<vmem>>, vector<8x32xf32>
    %c0_34 = arith.constant 0 : index
    %c0_35 = arith.constant 0 : index
    %114 = vector.load %arg10[%c0_34, %c0_35] : memref<8x32xf32, #tpu.memory_space<vmem>>, vector<8x32xf32>
    %c0_36 = arith.constant 0 : index
    %c0_37 = arith.constant 0 : index
    %115 = vector.load %arg5[%c0_36, %c0_37] : memref<8x32xf32, #tpu.memory_space<vmem>>, vector<8x32xf32>
    %cst = arith.constant dense<0.000000e+00> : vector<8x8xf32>
    %116 = tpu.matmul %115, %113, %cst {dimension_numbers = #tpu.dot_dimension_numbers<[1], [1], [0], [0], [0, 0, 1, 0], [], []>} : vector<8x32xf32>, vector<8x32xf32>, vector<8x8xf32> -> vector<8x8xf32>
    %c0_38 = arith.constant 0 : index
    %c0_39 = arith.constant 0 : index
    %117 = vector.load %arg6[%c0_38, %c0_39] : memref<8x32xf32, #tpu.memory_space<vmem>>, vector<8x32xf32>
    %cst_40 = arith.constant dense<0.000000e+00> : vector<8x8xf32>
    %118 = tpu.matmul %117, %114, %cst_40 {dimension_numbers = #tpu.dot_dimension_numbers<[1], [1], [0], [0], [0, 0, 1, 0], [], []>} : vector<8x32xf32>, vector<8x32xf32>, vector<8x8xf32> -> vector<8x8xf32>
    %119 = arith.addf %116, %118 : vector<8x8xf32>
    %120 = vector.extract_strided_slice %119 {offsets = [0, 0], sizes = [1, 8], strides = [1, 1]} : vector<8x8xf32> to vector<1x8xf32>
    %c0_41 = arith.constant 0 : index
    %121 = memref.load %arg7[%c0_41] : memref<1xf32, #tpu.memory_space<smem>>
    %122 = vector.broadcast %121 : f32 to vector<1x8xf32>
    %123 = arith.addf %120, %122 : vector<1x8xf32>
    %124 = arith.negf %123 : vector<1x8xf32>
    %125 = math.exp %124 : vector<1x8xf32>
    %cst_42 = arith.constant 1.000000e+00 : f32
    %126 = vector.broadcast %cst_42 : f32 to vector<1x8xf32>
    %127 = arith.addf %126, %125 : vector<1x8xf32>
    %128 = arith.divf %126, %127 : vector<1x8xf32>
    %129 = vector.shape_cast %128 : vector<1x8xf32> to vector<1x1x8xf32>
    %c0_43 = arith.constant 0 : index
    %c0_44 = arith.constant 0 : index
    %c0_45 = arith.constant 0 : index
    %130 = vector.load %arg8[%c0_43, %c0_44, %c0_45] : memref<1x1x8xf32, #tpu.memory_space<vmem>>, vector<1x1x8xf32>
    tpu.vector_store %arg8[%c0_43, %c0_44, %c0_45], %129 {strides = array<i32>} : memref<1x1x8xf32, #tpu.memory_space<vmem>>, vector<1x1x8xf32>,
    return
  }
  func.func @transform_0(%arg0: i32, %arg1: memref<8xi32, #tpu.memory_space<smem>>, %arg2: memref<8xi32, #tpu.memory_space<smem>>) -> (i32, i32) {
    %c0_i32 = arith.constant 0 : i32
    %c0_i32_0 = arith.constant 0 : i32
    %c0_i32_1 = arith.constant 0 : i32
    return %c0_i32, %c0_i32_0 : i32, i32
  }
  func.func @transform_1(%arg0: i32, %arg1: memref<8xi32, #tpu.memory_space<smem>>, %arg2: memref<8xi32, #tpu.memory_space<smem>>) -> (i32, i32) {
    %c0_i32 = arith.constant 0 : i32
    %c0_i32_0 = arith.constant 0 : i32
    %c0_i32_1 = arith.constant 0 : i32
    return %c0_i32, %c0_i32_0 : i32, i32
  }
  func.func @transform_2(%arg0: i32, %arg1: memref<8xi32, #tpu.memory_space<smem>>, %arg2: memref<8xi32, #tpu.memory_space<smem>>) -> (i32, i32) {
    %c0_i32 = arith.constant 0 : i32
    %c0_i32_0 = arith.constant 0 : i32
    %c0_i32_1 = arith.constant 0 : i32
    return %c0_i32, %c0_i32_0 : i32, i32
  }
  func.func @transform_3(%arg0: i32, %arg1: memref<8xi32, #tpu.memory_space<smem>>, %arg2: memref<8xi32, #tpu.memory_space<smem>>) -> (i32, i32) {
    %c0_i32 = arith.constant 0 : i32
    %c0_i32_0 = arith.constant 0 : i32
    %c0_i32_1 = arith.constant 0 : i32
    return %c0_i32, %c0_i32_0 : i32, i32
  }
  func.func @transform_4(%arg0: i32, %arg1: memref<8xi32, #tpu.memory_space<smem>>, %arg2: memref<8xi32, #tpu.memory_space<smem>>) -> i32 {
    %c0_i32 = arith.constant 0 : i32
    %c0_i32_0 = arith.constant 0 : i32
    return %c0_i32 : i32
  }
  func.func @transform_5(%arg0: i32, %arg1: memref<8xi32, #tpu.memory_space<smem>>, %arg2: memref<8xi32, #tpu.memory_space<smem>>) -> (i32, i32, i32) {
    %c0_i32 = arith.constant 0 : i32
    %c0_i32_0 = arith.constant 0 : i32
    %c0_i32_1 = arith.constant 0 : i32
    return %arg0, %c0_i32, %c0_i32_0 : i32, i32, i32
  }
}

</mosaic_0001>

<bundles_post_ra>
// kernel: tpu_custom_call.1
= control target key start
LH: loop header
LB: loop body
LE: loop exit
PB: predicated region body
PF: predicated region fallthrough
CT: control target
= control target key end

     0   :  { %s526_s0 = inlined_call_operand.vmem [shape: s32[8], index: 0, kind: input, shape index: {}]   ;;  %s527_s2 = inlined_call_operand.vmem [shape: f32[64,32], index: 2, kind: input, shape index: {}]   ;;  %s528_s3 = inlined_call_operand.vmem [shape: f32[128,32], index: 3, kind: input, shape index: {}]   ;;  %s529_s4 = inlined_call_operand.vmem [shape: f32[8,32], index: 4, kind: input, shape index: {}]   ;;  %s530_s5 = inlined_call_operand.vmem [shape: f32[8,32], index: 5, kind: input, shape index: {}]   ;;  %s531_s6 = inlined_call_operand.<no memory space> [shape: f32[1], index: 6, kind: input, shape index: {}]   ;;  %s532_s7 = inlined_call_operand.hbm [shape: f32[1,1,8], index: 7, kind: output, shape index: {}]   ;;  %s533_s1 = inlined_call_operand.vmem [shape: s32[8], index: 1, kind: input, shape index: {}]  }
   0x1   :  { %s12_s26 = sshll.u32 %s526_s0, 4  ;;  %s16_s29 = sshll.u32 %s533_s1, 4  ;;  %s13_s26 = int_to_ptr.vmem [resolvable:$true] %s12_s26  ;;  %s17_s29 = int_to_ptr.vmem [resolvable:$true] %s16_s29 }
   0x2   :  { %s347_s30 = scalar_lea.vmem %s13_s26, 16  ;;  %p352_p1 = scmp.lt.s32.totalorder %s13_s26, %s13_s26 }
   0x3   :  { %p348_p0 = scmp.ne.s32.totalorder %s13_s26, %s347_s30  ;;  %p353_p2 = scmp.lt.s32.totalorder %s347_s30, %s347_s30 }
   0x5   :  { %p354_p3 = por %p353_p2, %p352_p1 }
   0x7   :  { %p355_p4 = pnand %p354_p3, %p348_p0 }
   0x9   :  { %358 = shalt.err (!%p355_p4)  }
   0xa   :  { %s395_s8 = smov [#allocation5]   ;;  %s359_s9 = scalar_lea.vmem %s17_s29, 16 }
   0xb   :  { %15 = dma.vmem_to_smem %s13_s26, 16, %s395_s8, [#allocation4] }
   0xc   :  { %p360_p5 = scmp.ne.s32.totalorder %s17_s29, %s359_s9  ;;  %p364_p6 = scmp.lt.s32.totalorder %s17_s29, %s17_s29 }
   0xd   :  { %p365_p7 = scmp.lt.s32.totalorder %s359_s9, %s359_s9 }
   0xf   :  { %p366_p8 = por %p365_p7, %p364_p6 }
  0x11   :  { %p367_p9 = pnand %p366_p8, %p360_p5 }
  0x13   :  { %370 = shalt.err (!%p367_p9)  }
  0x14   :  { %s396_s0 = smov [#allocation6]  }
  0x15   :  { %19 = dma.vmem_to_smem %s17_s29, 16, %s396_s0, [#allocation4] }
  0x16   :  { %391 = dma.done.wait [#allocation4], 32 }
  0x17   :  { %392 = vsyncadd [#allocation4], 4294967264 }
  0x18   :  { %22 = sfence }
  0x19   :  { %s40_s1 = sld [smem:[#allocation6]]  ;;  %v397_v0 = vmov 0.0  }
  0x1a   :  { %328 = vmatprep.subr.mxu0 %v397_v0  ;;  %333 = vmatprep.subr.mxu1 %v397_v0  ;;  %s306_s10 = sld [smem:[#allocation6 + $0x1]] }
  0x1b   :  { %23 = vsyncpa [#allocation9], 0  ;;  %s308_s11 = sld [smem:[#allocation6 + $0x2]]  ;;  %vm398_vm0 = vmmov 0   ;;  %vm38_vm1 = vcmask 253952   ;;  %vm111_vm2 = vcmask 261120   ;;  %v265_v24 = vstv %s531_s6 }
  0x1c   :  { %330 = vmatprep.mubr.msk.f32.mxu0 %vm398_vm0, %v397_v0  ;;  %335 = vmatprep.mubr.msk.f32.mxu1 %vm398_vm0, %v397_v0  ;;  %s310_s12 = sld [smem:[#allocation6 + $0x3]]  ;;  %v110_v18 = vld [vmem:[%s530_s5] sm:$0xff]  ;;  %s399_s5 = smov [#allocation8]   ;;  %vm273_vm3 = vcmask 57344  }
  0x1d   :  { %s312_s13 = sld [smem:[#allocation6 + $0x4]]  ;;  %v109_v20 = vld [vmem:[%s529_s4] sm:$0xff] }
  0x1e   :  { %s314_s14 = sld [smem:[#allocation6 + $0x5]] }
  0x1f   :  { %s41_s17 = scalar_lea.vmem %s528_s3, %s40_s1  ;;  %s316_s18 = sld [smem:[#allocation6 + $0x6]] }
  0x20   :  { %v42_v1 = vld [vmem:[%s41_s17] sm:$0x1]  ;;  %s50_s21 = scalar_lea.vmem %s528_s3, %s306_s10  ;;  %s318_s22 = sld [smem:[#allocation6 + $0x7]] }
  0x21   :  { %43 = vst.msk [vmem:[#allocation3] sm:$0x1] %vm38_vm1, %v42_v1  ;;  %v51_v2 = vld [vmem:[%s50_s21] sm:$0x1]  ;;  %s59_s25 = scalar_lea.vmem %s528_s3, %s308_s11  ;;  %s35_s26 = sld [smem:[#allocation5]] }
  0x22   :  { %52 = vst.msk [vmem:[#allocation3 + $0x1] sm:$0x1] %vm38_vm1, %v51_v2  ;;  %v60_v3 = vld [vmem:[%s59_s25] sm:$0x1]  ;;  %s68_s29 = scalar_lea.vmem %s528_s3, %s310_s12  ;;  %s305_s30 = sld [smem:[#allocation5 + $0x1]] }
  0x23   :  { %61 = vst.msk [vmem:[#allocation3 + $0x2] sm:$0x1] %vm38_vm1, %v60_v3  ;;  %v69_v4 = vld [vmem:[%s68_s29] sm:$0x1]  ;;  %s77_s0 = scalar_lea.vmem %s528_s3, %s312_s13  ;;  %s307_s1 = sld [smem:[#allocation5 + $0x2]] }
  0x24   :  { %70 = vst.msk [vmem:[#allocation3 + $0x3] sm:$0x1] %vm38_vm1, %v69_v4  ;;  %v78_v5 = vld [vmem:[%s77_s0] sm:$0x1]  ;;  %s86_s15 = scalar_lea.vmem %s528_s3, %s314_s14  ;;  %s309_s16 = sld [smem:[#allocation5 + $0x3]] }
  0x25   :  { %79 = vst.msk [vmem:[#allocation3 + $0x4] sm:$0x1] %vm38_vm1, %v78_v5  ;;  %v87_v6 = vld [vmem:[%s86_s15] sm:$0x1]  ;;  %s95_s19 = scalar_lea.vmem %s528_s3, %s316_s18  ;;  %s311_s20 = sld [smem:[#allocation5 + $0x4]] }
  0x26   :  { %88 = vst.msk [vmem:[#allocation3 + $0x5] sm:$0x1] %vm38_vm1, %v87_v6  ;;  %v96_v7 = vld [vmem:[%s95_s19] sm:$0x1]  ;;  %s104_s23 = scalar_lea.vmem %s528_s3, %s318_s22  ;;  %s313_s24 = sld [smem:[#allocation5 + $0x5]] }
  0x27   :  { %97 = vst.msk [vmem:[#allocation3 + $0x6] sm:$0x1] %vm38_vm1, %v96_v7  ;;  %v105_v8 = vld [vmem:[%s104_s23] sm:$0x1]  ;;  %s36_s27 = scalar_lea.vmem %s527_s2, %s35_s26  ;;  %s315_s28 = sld [smem:[#allocation5 + $0x6]] }
  0x28   :  { %106 = vst.msk [vmem:[#allocation3 + $0x7] sm:$0x1] %vm38_vm1, %v105_v8  ;;  %v37_v9 = vld [vmem:[%s36_s27] sm:$0x1]  ;;  %s46_s8 = scalar_lea.vmem %s527_s2, %s305_s30  ;;  %s317_s9 = sld [smem:[#allocation5 + $0x7]] }
  0x29   :  { %39 = vst.msk [vmem:[#allocation2] sm:$0x1] %vm38_vm1, %v37_v9  ;;  %v47_v10 = vld [vmem:[%s46_s8] sm:$0x1]  ;;  %s55_s0 = scalar_lea.vmem %s527_s2, %s307_s1  ;;  %s281_s29 = sshll.u32 %s399_s5, 4  ;;  %s282_s29 = int_to_ptr.vmem [resolvable:$true] %s281_s29 }
  0x2a   :  { %48 = vst.msk [vmem:[#allocation2 + $0x1] sm:$0x1] %vm38_vm1, %v47_v10  ;;  %v56_v11 = vld [vmem:[%s55_s0] sm:$0x1]  ;;  %s64_s11 = scalar_lea.vmem %s527_s2, %s309_s16  ;;  %s371_s4 = scalar_lea.vmem %s282_s29, 16 }
  0x2b   :  { %57 = vst.msk [vmem:[#allocation2 + $0x2] sm:$0x1] %vm38_vm1, %v56_v11  ;;  %v65_v12 = vld [vmem:[%s64_s11] sm:$0x1]  ;;  %s73_s12 = scalar_lea.vmem %s527_s2, %s311_s20  ;;  %p372_p10 = scmp.ne.s32.totalorder %s282_s29, %s371_s4 }
  0x2c   :  { %66 = vst.msk [vmem:[#allocation2 + $0x3] sm:$0x1] %vm38_vm1, %v65_v12  ;;  %v74_v13 = vld [vmem:[%s73_s12] sm:$0x1]  ;;  %s82_s1 = scalar_lea.vmem %s527_s2, %s313_s24  ;;  %s375_s8 = scalar_lea.vmem %s282_s29, 32 }
  0x2d   :  { %75 = vst.msk [vmem:[#allocation2 + $0x4] sm:$0x1] %vm38_vm1, %v74_v13  ;;  %v83_v14 = vld [vmem:[%s82_s1] sm:$0x1]  ;;  %s91_s21 = scalar_lea.vmem %s527_s2, %s315_s28  ;;  %p376_p11 = scmp.lt.s32.totalorder %s282_s29, %s282_s29 }
  0x2e   :  { %84 = vst.msk [vmem:[#allocation2 + $0x5] sm:$0x1] %vm38_vm1, %v83_v14  ;;  %v92_v15 = vld [vmem:[%s91_s21] sm:$0x1]  ;;  %s100_s14 = scalar_lea.vmem %s527_s2, %s317_s9  ;;  %p377_p12 = scmp.lt.s32.totalorder %s375_s8, %s371_s4 }
  0x2f   :  { %v108_v16 = vld [vmem:[#allocation3] sm:$0xff]  ;;  %93 = vst.msk [vmem:[#allocation2 + $0x6] sm:$0x1] %vm38_vm1, %v92_v15  ;;  %v101_v17 = vld [vmem:[%s100_s14] sm:$0x1] }
  0x30   :  { %329 = vmatpush3.xpose.msk.msra.mxu0 %vm111_vm2, %v108_v16  ;;  %102 = vst.msk [vmem:[#allocation2 + $0x7] sm:$0x1] %vm38_vm1, %v101_v17  ;;  %p378_p13 = por %p377_p12, %p376_p11 }
  0x32   :  { %p379_p0 = pnand %p378_p13, %p372_p10 }
  0x33   :  { %331 = vmatmul.mubr.msk.f32.vlgmr.msra.gmra.mxu0 %vm111_vm2, %v110_v18 }
  0x37   :  { %v107_v19 = vld [vmem:[#allocation2] sm:$0xff] }
  0x38   :  { %334 = vmatpush3.xpose.msk.msra.mxu1 %vm111_vm2, %v107_v19 }
  0x3b   :  { %336 = vmatmul.mubr.msk.f32.vlgmr.msra.gmra.mxu1 %vm111_vm2, %v109_v20 }
  0xf3   :  { %v184_v21 = vpop.f32.mrf.mxu0 }
  0xf5   :  { %v332_v22 = vpop.f32.mrf.mxu0 }
  0xfb   :  { %v260_v23 = vpop.f32.mrf.mxu1 }
  0xfc   :  { %v261_v25 = vadd.f32 %v260_v23, %v184_v21 }
  0xfd   :  { %v337_v26 = vpop.f32.mrf.mxu1 }
  0xfe   :  { %v266_v27 = vadd.f32 %v265_v24, %v261_v25 }
 0x100   :  { %v323_v28 = vmul.f32 -1.442695, %v266_v27 }
 0x102   :  { %343 = vpow2.f32 %v323_v28 }
 0x10f   :  { %v344_v29 = vpop.eup %343 }
 0x110   :  { %v270_v30 = vadd.f32 1.0, %v344_v29 }
 0x112   :  { %345 = vrcp.f32 %v270_v30 }
 0x11f   :  { %v346_v31 = vpop.eup %345 }
 0x120   :  { %274 = vst.msk [vmem:[#allocation8] sm:$0x1] %vm273_vm3, %v346_v31 }
 0x121   :  { %382 = shalt.err (!%p379_p0)
}
 0x122   :  { %284 = dma.vmem_to_hbm [thread:$0]  %s282_s29, 16, %s532_s7, [#allocation9]  }
 0x123   :  { %393 = dma.done.wait [#allocation9], 16  }
 0x124   :  { %394 = vsyncadd [#allocation9], 4294967280 }
 0x125   :  { %288 = vsyncpa [#allocation9], 1 }

</bundles_post_ra>
